<compile_context>
chip_gen: v6e
topology: v6e:2x2x1
jax: 0.10.0
libtpu: 0.0.40
codegen_flags: <defaults>
</compile_context>

<pallas_src>
import functools

import jax
import jax.numpy as jnp
from jax.experimental import pallas as pl
from jax.experimental.pallas import tpu as pltpu

IN_CH = 1
OUT_CH = 1
HIDDEN = 10            # hidden_channels
LIFT = 2 * HIDDEN      # lifting_channel_ratio = 2
PROJ = 2 * HIDDEN      # projection_channel_ratio = 2
MLP_HID = HIDDEN // 2  # channel_mlp_expansion = 0.5

# dtype for MXU matmul *operands* (accumulation stays f32 via
# preferred_element_type); operand-only cast is safe on v5e and hits the
# native bf16 MXU path on v6e/v7x.
_DOT_DT = jnp.bfloat16

# ---- packed weight slab layout: rows 8-aligned, 32 lanes wide -------------
W_COLS = 32
_OFF_LW1X = 0      # (LIFT, IN_CH)      rows 0..19
_OFF_LW2 = 24      # (HIDDEN, LIFT)     rows 24..33
_OFF_SPW = 40      # (HIDDEN, HIDDEN)   rows 40..49
_OFF_SKW = 56      # (HIDDEN, HIDDEN)   rows 56..65
_OFF_MW1 = 72      # (MLP_HID, HIDDEN)  rows 72..76
_OFF_MW2 = 80      # (HIDDEN, MLP_HID)  rows 80..89
_OFF_PW1 = 96      # (PROJ, HIDDEN)     rows 96..115
_OFF_PW2 = 120     # (OUT_CH, PROJ)     rows 120..120
W_ROWS = 128

# ---- packed bias slab layout: single column, rows 8-aligned ---------------
_OFF_LB2 = 0       # HIDDEN
_OFF_SPB = 16      # HIDDEN
_OFF_GATE = 32     # HIDDEN
_OFF_MB1 = 48      # MLP_HID
_OFF_MB2 = 56      # HIDDEN
_OFF_PB1 = 72      # PROJ
_OFF_PB2 = 96      # OUT_CH
B_ROWS = 104


def _gelu(x):
    # TODO(synk): torch.nn.functional.gelu defaults to the exact erf form; Mosaic
    # has no erf lowering, so the tanh approximation is used (max diff ~1e-3).
    c = jnp.float32(0.7978845608028654)  # sqrt(2/pi)
    return 0.5 * x * (1.0 + jnp.tanh(c * (x + 0.044715 * x * x * x)))


def _mm(a, b):
    # bf16 operands, f32 accumulation (MXU-friendly on every generation).
    return jnp.dot(a.astype(_DOT_DT), b.astype(_DOT_DT),
                   preferred_element_type=jnp.float32)


# ---------------------------------------------------------------------------
# Single fused kernel: one grid step == Bt batch elements, channels-first,
# pixels (Bt*HW of them) on the lane axis.
#   x_ref  : (1, 1, N)        input channel rows of this step's batches
#   cb_ref : (LIFT, N)        coord-channel contribution + b1 (batch-invariant)
#   w_ref  : (W_ROWS, W_COLS) packed weight slab
#   b_ref  : (B_ROWS, 1)      packed bias/gate column slab
#   o_ref  : (1, 1, N)
# ---------------------------------------------------------------------------
def _fused_fno_kernel(x_ref, cb_ref, w_ref, b_ref, o_ref, *, bt, hw):
    n = bt * hw

    # -- static slices into the packed slabs (tiny loads) ---------------------
    lw1x = w_ref[_OFF_LW1X:_OFF_LW1X + LIFT, 0:IN_CH]        # (LIFT, 1)
    lw2 = w_ref[_OFF_LW2:_OFF_LW2 + HIDDEN, 0:LIFT]          # (HIDDEN, LIFT)
    spw = w_ref[_OFF_SPW:_OFF_SPW + HIDDEN, 0:HIDDEN]        # (HIDDEN, HIDDEN)
    skw = w_ref[_OFF_SKW:_OFF_SKW + HIDDEN, 0:HIDDEN]        # (HIDDEN, HIDDEN)
    mw1 = w_ref[_OFF_MW1:_OFF_MW1 + MLP_HID, 0:HIDDEN]       # (MLP_HID, HIDDEN)
    mw2 = w_ref[_OFF_MW2:_OFF_MW2 + HIDDEN, 0:MLP_HID]       # (HIDDEN, MLP_HID)
    pw1 = w_ref[_OFF_PW1:_OFF_PW1 + PROJ, 0:HIDDEN]          # (PROJ, HIDDEN)
    pw2 = w_ref[_OFF_PW2:_OFF_PW2 + OUT_CH, 0:PROJ]          # (1, PROJ)

    lb2 = b_ref[_OFF_LB2:_OFF_LB2 + HIDDEN, 0:1]
    spb = b_ref[_OFF_SPB:_OFF_SPB + HIDDEN, 0:1]
    gate = b_ref[_OFF_GATE:_OFF_GATE + HIDDEN, 0:1]
    mb1 = b_ref[_OFF_MB1:_OFF_MB1 + MLP_HID, 0:1]
    mb2 = b_ref[_OFF_MB2:_OFF_MB2 + HIDDEN, 0:1]
    pb1 = b_ref[_OFF_PB1:_OFF_PB1 + PROJ, 0:1]
    pb2 = b_ref[_OFF_PB2:_OFF_PB2 + OUT_CH, 0:1]

    x = x_ref[0]                                              # (1, N)
    x_b = jnp.broadcast_to(x, (LIFT, n))                      # sublane broadcast

    # ---- lifting ChannelMLP: (1 input ch + 2 coord ch) -> LIFT -(GELU)-> HIDDEN
    # coord-channel part of layer 1 (+ its bias) is the precomputed cb_ref.
    h1 = _gelu(lw1x * x_b + cb_ref[...])                      # (LIFT, N)
    y = _mm(lw2, h1) + lb2                                    # (HIDDEN, N)

    # ---- SpectralConv, n_modes=(1,1): only the (0,0) mode survives ----------
    # rfft2(norm="forward") DC bin == per-batch spatial mean; irfft2 broadcasts
    # it back.  Mean is taken FIRST (lane reduction), then the 10x10 spectral
    # weight hits a (HIDDEN, Bt) micro-operand -- no HW-wide matmul.  The
    # imaginary spectral weight never reaches the real output (irfft2 discards
    # the imaginary DC part), so only spec_wr participates.
    sum_y = jnp.sum(y.reshape(HIDDEN, bt, hw), axis=-1)       # (HIDDEN, Bt)
    spec = (jnp.dot(spw, sum_y, preferred_element_type=jnp.float32)
            * jnp.float32(1.0 / hw) + spb)                    # (HIDDEN, Bt)
    spec_b = jnp.broadcast_to(spec[:, :, None],
                              (HIDDEN, bt, hw)).reshape(HIDDEN, n)

    # ---- FNO block: spectral + linear fno skip, channel MLP, soft-gating skip
    z = spec_b + _mm(skw, y)                                  # (HIDDEN, N)
    h = _gelu(_mm(mw1, z) + mb1)                              # (MLP_HID, N)
    mlp = _mm(mw2, h) + mb2                                   # (HIDDEN, N)
    # TODO(synk): baseline wiring kept (soft-gating applied to z, no GELU on z
    # before the channel MLP); some neuraloperator releases gate the block
    # input y instead.
    zb = mlp + gate * z                                       # (HIDDEN, N)

    # ---- projection ChannelMLP: HIDDEN -> PROJ -(GELU)-> OUT_CH --------------
    hp = _gelu(_mm(pw1, zb) + pb1)                            # (PROJ, N)
    out = _mm(pw2, hp) + pb2                                  # (1, N)

    o_ref[0] = out.astype(o_ref.dtype)


# ---------------------------------------------------------------------------
# Parameters (deterministic, synthetic) — stored (C_in, C_out) like the
# baseline; the wrapper transposes the tiny matrices and packs the slabs.
# ---------------------------------------------------------------------------
def init_params(key):
    ks = jax.random.split(key, 16)

    def u(k, shape, fan_in):
        s = fan_in ** -0.5
        return jax.random.uniform(k, shape, jnp.float32, -s, s)

    p = {}
    # lifting ChannelMLP: (in + 2 grid channels) -> LIFT -> HIDDEN
    p["lift_w1"] = u(ks[0], (IN_CH + 2, LIFT), IN_CH + 2)
    p["lift_b1"] = u(ks[1], (LIFT,), IN_CH + 2)
    p["lift_w2"] = u(ks[2], (LIFT, HIDDEN), LIFT)
    p["lift_b2"] = u(ks[3], (HIDDEN,), LIFT)
    # SpectralConv (single (0,0) mode) complex weight + bias.
    sstd = (2.0 / (HIDDEN + HIDDEN)) ** 0.5
    p["spec_wr"] = sstd * jax.random.normal(ks[4], (HIDDEN, HIDDEN), jnp.float32)
    # spec_wi is mathematically inert for the real output (irfft2 discards the
    # imaginary DC part); kept only for parameter-structure parity.
    p["spec_wi"] = sstd * jax.random.normal(ks[5], (HIDDEN, HIDDEN), jnp.float32)
    p["spec_b"] = sstd * jax.random.normal(ks[6], (HIDDEN,), jnp.float32)
    # fno skip: bias-free pointwise linear
    p["skip_w"] = u(ks[7], (HIDDEN, HIDDEN), HIDDEN)
    # channel-mlp skip: soft-gating, weights init to ones, no bias
    p["gate_w"] = jnp.ones((HIDDEN,), jnp.float32)
    # block channel MLP: HIDDEN -> HIDDEN//2 -> HIDDEN
    p["mlp_w1"] = u(ks[8], (HIDDEN, MLP_HID), HIDDEN)
    p["mlp_b1"] = u(ks[9], (MLP_HID,), HIDDEN)
    p["mlp_w2"] = u(ks[10], (MLP_HID, HIDDEN), MLP_HID)
    p["mlp_b2"] = u(ks[11], (HIDDEN,), MLP_HID)
    # projection ChannelMLP: HIDDEN -> PROJ -> OUT_CH
    p["proj_w1"] = u(ks[12], (HIDDEN, PROJ), HIDDEN)
    p["proj_b1"] = u(ks[13], (PROJ,), HIDDEN)
    p["proj_w2"] = u(ks[14], (PROJ, OUT_CH), PROJ)
    p["proj_b2"] = u(ks[15], (OUT_CH,), PROJ)
    return p


def _pack_slabs(params):
    """Pack all tiny channels-first weights/biases into two VMEM-friendly slabs."""
    w = jnp.zeros((W_ROWS, W_COLS), jnp.float32)
    w = w.at[_OFF_LW1X:_OFF_LW1X + LIFT, 0:IN_CH].set(params["lift_w1"][:IN_CH].T)
    w = w.at[_OFF_LW2:_OFF_LW2 + HIDDEN, 0:LIFT].set(params["lift_w2"].T)
    w = w.at[_OFF_SPW:_OFF_SPW + HIDDEN, 0:HIDDEN].set(params["spec_wr"].T)
    w = w.at[_OFF_SKW:_OFF_SKW + HIDDEN, 0:HIDDEN].set(params["skip_w"].T)
    w = w.at[_OFF_MW1:_OFF_MW1 + MLP_HID, 0:HIDDEN].set(params["mlp_w1"].T)
    w = w.at[_OFF_MW2:_OFF_MW2 + HIDDEN, 0:MLP_HID].set(params["mlp_w2"].T)
    w = w.at[_OFF_PW1:_OFF_PW1 + PROJ, 0:HIDDEN].set(params["proj_w1"].T)
    w = w.at[_OFF_PW2:_OFF_PW2 + OUT_CH, 0:PROJ].set(params["proj_w2"].T)

    b = jnp.zeros((B_ROWS, 1), jnp.float32)
    b = b.at[_OFF_LB2:_OFF_LB2 + HIDDEN, 0].set(params["lift_b2"])
    b = b.at[_OFF_SPB:_OFF_SPB + HIDDEN, 0].set(params["spec_b"])
    b = b.at[_OFF_GATE:_OFF_GATE + HIDDEN, 0].set(params["gate_w"])
    b = b.at[_OFF_MB1:_OFF_MB1 + MLP_HID, 0].set(params["mlp_b1"])
    b = b.at[_OFF_MB2:_OFF_MB2 + HIDDEN, 0].set(params["mlp_b2"])
    b = b.at[_OFF_PB1:_OFF_PB1 + PROJ, 0].set(params["proj_b1"])
    b = b.at[_OFF_PB2:_OFF_PB2 + OUT_CH, 0].set(params["proj_b2"])
    return w, b


# ---------------------------------------------------------------------------
# Full forward (MyFNO.forward): one fused pallas_call, batches folded onto the
# lane axis, n_steps parallel grid steps (2 when B is even -> both v7x TCs).
# ---------------------------------------------------------------------------
def myfno_forward(params, x, n_steps=None):
    b, cin, h, w = x.shape
    assert cin == IN_CH
    hw = h * w

    if n_steps is None:
        n_steps = 2 if (b % 2 == 0) else 1
    bt = b // n_steps
    n = bt * hw

    # channels-first flattened pixels, batch groups concatenated on lanes
    # (plain reshapes, no transposes).
    xf = x.astype(jnp.float32).reshape(n_steps, 1, n)          # (S, 1, Bt*HW)

    # GridEmbedding2D (regular_grid: linspace(0,1,n+1)[:-1]) folded through the
    # first lifting layer into a batch-invariant (LIFT, HW) additive bias,
    # tiled across the Bt folded batches of each step.
    gx = jnp.linspace(0.0, 1.0, h + 1)[:-1]
    gy = jnp.linspace(0.0, 1.0, w + 1)[:-1]
    grid_x = jnp.broadcast_to(gx[:, None], (h, w)).reshape(1, hw)
    grid_y = jnp.broadcast_to(gy[None, :], (h, w)).reshape(1, hw)
    coords = jnp.concatenate([grid_x, grid_y], axis=0)          # (2, HW)
    cb = (params["lift_w1"][IN_CH:].T @ coords
          + params["lift_b1"][:, None]).astype(jnp.float32)     # (LIFT, HW)
    if bt > 1:
        cb = jnp.tile(cb, (1, bt))                               # (LIFT, Bt*HW)

    w_slab, b_slab = _pack_slabs(params)

    kernel = functools.partial(_fused_fno_kernel, bt=bt, hw=hw)

    mm_cols = (LIFT * HIDDEN + HIDDEN * HIDDEN + HIDDEN * MLP_HID
               + MLP_HID * HIDDEN + HIDDEN * PROJ + PROJ * OUT_CH)
    cost = pl.CostEstimate(
        flops=int(2 * b * hw * mm_cols + 2 * b * hw * LIFT),
        transcendentals=int(b * hw * (LIFT + MLP_HID + PROJ)),
        bytes_accessed=int(4 * (2 * b * hw + LIFT * n
                                + W_ROWS * W_COLS + B_ROWS)))

    def full2(shape):  # whole (small) array resident for every grid step
        return pl.BlockSpec(shape, lambda i: (0, 0))

    # TODO(synk): for very large H*W (esp. on v7x's 64 MiB VMEM) pixels should
    # become a second "arbitrary" grid axis with a scratch accumulator for the
    # per-batch spectral partial sum; for this module's 16x16 / 64x64 grids
    # the whole per-step slice fits trivially in every generation's VMEM.
    out = pl.pallas_call(
        kernel,
        out_shape=jax.ShapeDtypeStruct((n_steps, 1, n), jnp.float32),
        grid_spec=pltpu.PrefetchScalarGridSpec(
            num_scalar_prefetch=0,
            grid=(n_steps,),
            in_specs=[
                pl.BlockSpec((1, 1, n), lambda i: (i, 0, 0)),    # x
                full2((LIFT, n)),                                # coord bias
                full2((W_ROWS, W_COLS)),                         # weight slab
                full2((B_ROWS, 1)),                              # bias slab
            ],
            out_specs=pl.BlockSpec((1, 1, n), lambda i: (i, 0, 0)),
        ),
        compiler_params=pltpu.CompilerParams(
            dimension_semantics=("parallel",)),
        cost_estimate=cost,
    )(xf, cb, w_slab, b_slab)

    return out.reshape(b, OUT_CH, h, w)


if __name__ == "__main__":
    key = jax.random.PRNGKey(0)
    pkey, xkey = jax.random.split(key)
    params = init_params(pkey)

    # small shapes consistent with the module: batch=2, 1 channel, 16x16 grid
    x = jax.random.normal(xkey, (2, 1, 16, 16), jnp.float32)

    y_hat = jax.jit(myfno_forward)(params, x)
    jax.block_until_ready(y_hat)
    assert y_hat.shape == (2, 1, 16, 16)
    assert bool(jnp.all(jnp.isfinite(y_hat)))
    print("KERNEL_OK")
</pallas_src>

<mosaic_0001>
module attributes {stable_mosaic.version = 11 : i64} {
  func.func @_fused_fno_kernel(%arg0: i32, %arg1: memref<1x1x256xf32, #tpu.memory_space<vmem>>, %arg2: memref<20x256xf32, #tpu.memory_space<vmem>>, %arg3: memref<128x32xf32, #tpu.memory_space<vmem>>, %arg4: memref<104x1xf32, #tpu.memory_space<vmem>>, %arg5: memref<1x1x256xf32, #tpu.memory_space<vmem>>) attributes {dimension_semantics = [#tpu.dimension_semantics<parallel>], iteration_bounds = array<i64: 2>, scalar_prefetch = 0 : i64, scratch_operands = 0 : i64, tpu.core_type = #tpu.core_type<tc>, window_params = [{transform_indices = @transform_0, window_bounds = array<i64: 1, 1, 256>}, {pipeline_mode = #tpu.pipeline_mode<synchronous>, transform_indices = @transform_1, window_bounds = array<i64: 20, 256>}, {pipeline_mode = #tpu.pipeline_mode<synchronous>, transform_indices = @transform_2, window_bounds = array<i64: 128, 32>}, {pipeline_mode = #tpu.pipeline_mode<synchronous>, transform_indices = @transform_3, window_bounds = array<i64: 104, 1>}, {transform_indices = @transform_4, window_bounds = array<i64: 1, 1, 256>}]} {
    %c0 = arith.constant 0 : index
    %c0_0 = arith.constant 0 : index
    %0 = vector.load %arg3[%c0, %c0_0] : memref<128x32xf32, #tpu.memory_space<vmem>>, vector<20x1xf32>
    %c24 = arith.constant 24 : index
    %c0_1 = arith.constant 0 : index
    %1 = vector.load %arg3[%c24, %c0_1] : memref<128x32xf32, #tpu.memory_space<vmem>>, vector<10x20xf32>
    %c40 = arith.constant 40 : index
    %c0_2 = arith.constant 0 : index
    %2 = vector.load %arg3[%c40, %c0_2] : memref<128x32xf32, #tpu.memory_space<vmem>>, vector<10x10xf32>
    %c56 = arith.constant 56 : index
    %c0_3 = arith.constant 0 : index
    %3 = vector.load %arg3[%c56, %c0_3] : memref<128x32xf32, #tpu.memory_space<vmem>>, vector<10x10xf32>
    %c72 = arith.constant 72 : index
    %c0_4 = arith.constant 0 : index
    %4 = vector.load %arg3[%c72, %c0_4] : memref<128x32xf32, #tpu.memory_space<vmem>>, vector<5x10xf32>
    %c80 = arith.constant 80 : index
    %c0_5 = arith.constant 0 : index
    %5 = vector.load %arg3[%c80, %c0_5] : memref<128x32xf32, #tpu.memory_space<vmem>>, vector<10x5xf32>
    %c96 = arith.constant 96 : index
    %c0_6 = arith.constant 0 : index
    %6 = vector.load %arg3[%c96, %c0_6] : memref<128x32xf32, #tpu.memory_space<vmem>>, vector<20x10xf32>
    %c120 = arith.constant 120 : index
    %c0_7 = arith.constant 0 : index
    %7 = vector.load %arg3[%c120, %c0_7] : memref<128x32xf32, #tpu.memory_space<vmem>>, vector<1x20xf32>
    %c0_8 = arith.constant 0 : index
    %c0_9 = arith.constant 0 : index
    %8 = vector.load %arg4[%c0_8, %c0_9] : memref<104x1xf32, #tpu.memory_space<vmem>>, vector<10x1xf32>
    %c16 = arith.constant 16 : index
    %c0_10 = arith.constant 0 : index
    %9 = vector.load %arg4[%c16, %c0_10] : memref<104x1xf32, #tpu.memory_space<vmem>>, vector<10x1xf32>
    %c32 = arith.constant 32 : index
    %c0_11 = arith.constant 0 : index
    %10 = vector.load %arg4[%c32, %c0_11] : memref<104x1xf32, #tpu.memory_space<vmem>>, vector<10x1xf32>
    %c48 = arith.constant 48 : index
    %c0_12 = arith.constant 0 : index
    %11 = vector.load %arg4[%c48, %c0_12] : memref<104x1xf32, #tpu.memory_space<vmem>>, vector<5x1xf32>
    %c56_13 = arith.constant 56 : index
    %c0_14 = arith.constant 0 : index
    %12 = vector.load %arg4[%c56_13, %c0_14] : memref<104x1xf32, #tpu.memory_space<vmem>>, vector<10x1xf32>
    %c72_15 = arith.constant 72 : index
    %c0_16 = arith.constant 0 : index
    %13 = vector.load %arg4[%c72_15, %c0_16] : memref<104x1xf32, #tpu.memory_space<vmem>>, vector<20x1xf32>
    %c96_17 = arith.constant 96 : index
    %c0_18 = arith.constant 0 : index
    %14 = vector.load %arg4[%c96_17, %c0_18] : memref<104x1xf32, #tpu.memory_space<vmem>>, vector<1x1xf32>
    %c0_19 = arith.constant 0 : index
    %c0_20 = arith.constant 0 : index
    %c0_21 = arith.constant 0 : index
    %15 = vector.load %arg1[%c0_19, %c0_20, %c0_21] : memref<1x1x256xf32, #tpu.memory_space<vmem>>, vector<1x1x256xf32>
    %16 = vector.shape_cast %15 : vector<1x1x256xf32> to vector<1x256xf32>
    %17 = vector.shape_cast %16 : vector<1x256xf32> to vector<1x256xf32>
    %18 = vector.broadcast %17 : vector<1x256xf32> to vector<20x256xf32>
    %19 = vector.broadcast %0 : vector<20x1xf32> to vector<20x256xf32>
    %20 = arith.mulf %19, %18 : vector<20x256xf32>
    %c0_22 = arith.constant 0 : index
    %c0_23 = arith.constant 0 : index
    %21 = vector.load %arg2[%c0_22, %c0_23] : memref<20x256xf32, #tpu.memory_space<vmem>>, vector<20x256xf32>
    %22 = arith.addf %20, %21 : vector<20x256xf32>
    %cst = arith.constant 5.000000e-01 : f32
    %23 = vector.broadcast %cst : f32 to vector<20x256xf32>
    %24 = arith.mulf %23, %22 : vector<20x256xf32>
    %cst_24 = arith.constant 4.471500e-02 : f32
    %25 = vector.broadcast %cst_24 : f32 to vector<20x256xf32>
    %26 = arith.mulf %25, %22 : vector<20x256xf32>
    %27 = arith.mulf %26, %22 : vector<20x256xf32>
    %28 = arith.mulf %27, %22 : vector<20x256xf32>
    %29 = arith.addf %22, %28 : vector<20x256xf32>
    %cst_25 = arith.constant 0.797884583 : f32
    %30 = vector.broadcast %cst_25 : f32 to vector<20x256xf32>
    %31 = arith.mulf %30, %29 : vector<20x256xf32>
    %32 = math.tanh %31 : vector<20x256xf32>
    %cst_26 = arith.constant 1.000000e+00 : f32
    %33 = vector.broadcast %cst_26 : f32 to vector<20x256xf32>
    %34 = arith.addf %33, %32 : vector<20x256xf32>
    %35 = arith.mulf %24, %34 : vector<20x256xf32>
    %36 = arith.truncf %1 : vector<10x20xf32> to vector<10x20xbf16>
    %37 = arith.truncf %35 : vector<20x256xf32> to vector<20x256xbf16>
    %cst_27 = arith.constant dense<0.000000e+00> : vector<10x256xf32>
    %38 = tpu.matmul %36, %37, %cst_27 {dimension_numbers = #tpu.dot_dimension_numbers<[1], [0], [0], [1], [0, 0, 1, 1], [], []>} : vector<10x20xbf16>, vector<20x256xbf16>, vector<10x256xf32> -> vector<10x256xf32>
    %39 = vector.broadcast %8 : vector<10x1xf32> to vector<10x256xf32>
    %40 = arith.addf %38, %39 : vector<10x256xf32>
    %41 = vector.shape_cast %40 : vector<10x256xf32> to vector<10x1x256xf32>
    %cst_28 = arith.constant dense<0.000000e+00> : vector<10x1xf32>
    %42 = vector.multi_reduction <add>, %41, %cst_28 [2] : vector<10x1x256xf32> to vector<10x1xf32>
    %cst_29 = arith.constant dense<0.000000e+00> : vector<10x1xf32>
    %43 = tpu.matmul %2, %42, %cst_29 {dimension_numbers = #tpu.dot_dimension_numbers<[1], [0], [0], [1], [0, 0, 1, 1], [], []>} : vector<10x10xf32>, vector<10x1xf32>, vector<10x1xf32> -> vector<10x1xf32>
    %cst_30 = arith.constant 3.906250e-03 : f32
    %44 = vector.broadcast %cst_30 : f32 to vector<10x1xf32>
    %45 = arith.mulf %43, %44 : vector<10x1xf32>
    %46 = arith.addf %45, %9 : vector<10x1xf32>
    %47 = vector.shape_cast %46 : vector<10x1xf32> to vector<10x1x1xf32>
    %48 = vector.shape_cast %47 : vector<10x1x1xf32> to vector<10x1x1xf32>
    %49 = vector.broadcast %48 : vector<10x1x1xf32> to vector<10x1x256xf32>
    %50 = vector.shape_cast %49 : vector<10x1x256xf32> to vector<10x256xf32>
    %51 = arith.truncf %3 : vector<10x10xf32> to vector<10x10xbf16>
    %52 = arith.truncf %40 : vector<10x256xf32> to vector<10x256xbf16>
    %cst_31 = arith.constant dense<0.000000e+00> : vector<10x256xf32>
    %53 = tpu.matmul %51, %52, %cst_31 {dimension_numbers = #tpu.dot_dimension_numbers<[1], [0], [0], [1], [0, 0, 1, 1], [], []>} : vector<10x10xbf16>, vector<10x256xbf16>, vector<10x256xf32> -> vector<10x256xf32>
    %54 = arith.addf %50, %53 : vector<10x256xf32>
    %55 = arith.truncf %4 : vector<5x10xf32> to vector<5x10xbf16>
    %56 = arith.truncf %54 : vector<10x256xf32> to vector<10x256xbf16>
    %cst_32 = arith.constant dense<0.000000e+00> : vector<5x256xf32>
    %57 = tpu.matmul %55, %56, %cst_32 {dimension_numbers = #tpu.dot_dimension_numbers<[1], [0], [0], [1], [0, 0, 1, 1], [], []>} : vector<5x10xbf16>, vector<10x256xbf16>, vector<5x256xf32> -> vector<5x256xf32>
    %58 = vector.broadcast %11 : vector<5x1xf32> to vector<5x256xf32>
    %59 = arith.addf %57, %58 : vector<5x256xf32>
    %cst_33 = arith.constant 5.000000e-01 : f32
    %60 = vector.broadcast %cst_33 : f32 to vector<5x256xf32>
    %61 = arith.mulf %60, %59 : vector<5x256xf32>
    %cst_34 = arith.constant 4.471500e-02 : f32
    %62 = vector.broadcast %cst_34 : f32 to vector<5x256xf32>
    %63 = arith.mulf %62, %59 : vector<5x256xf32>
    %64 = arith.mulf %63, %59 : vector<5x256xf32>
    %65 = arith.mulf %64, %59 : vector<5x256xf32>
    %66 = arith.addf %59, %65 : vector<5x256xf32>
    %cst_35 = arith.constant 0.797884583 : f32
    %67 = vector.broadcast %cst_35 : f32 to vector<5x256xf32>
    %68 = arith.mulf %67, %66 : vector<5x256xf32>
    %69 = math.tanh %68 : vector<5x256xf32>
    %cst_36 = arith.constant 1.000000e+00 : f32
    %70 = vector.broadcast %cst_36 : f32 to vector<5x256xf32>
    %71 = arith.addf %70, %69 : vector<5x256xf32>
    %72 = arith.mulf %61, %71 : vector<5x256xf32>
    %73 = arith.truncf %5 : vector<10x5xf32> to vector<10x5xbf16>
    %74 = arith.truncf %72 : vector<5x256xf32> to vector<5x256xbf16>
    %cst_37 = arith.constant dense<0.000000e+00> : vector<10x256xf32>
    %75 = tpu.matmul %73, %74, %cst_37 {dimension_numbers = #tpu.dot_dimension_numbers<[1], [0], [0], [1], [0, 0, 1, 1], [], []>} : vector<10x5xbf16>, vector<5x256xbf16>, vector<10x256xf32> -> vector<10x256xf32>
    %76 = vector.broadcast %12 : vector<10x1xf32> to vector<10x256xf32>
    %77 = arith.addf %75, %76 : vector<10x256xf32>
    %78 = vector.broadcast %10 : vector<10x1xf32> to vector<10x256xf32>
    %79 = arith.mulf %78, %54 : vector<10x256xf32>
    %80 = arith.addf %77, %79 : vector<10x256xf32>
    %81 = arith.truncf %6 : vector<20x10xf32> to vector<20x10xbf16>
    %82 = arith.truncf %80 : vector<10x256xf32> to vector<10x256xbf16>
    %cst_38 = arith.constant dense<0.000000e+00> : vector<20x256xf32>
    %83 = tpu.matmul %81, %82, %cst_38 {dimension_numbers = #tpu.dot_dimension_numbers<[1], [0], [0], [1], [0, 0, 1, 1], [], []>} : vector<20x10xbf16>, vector<10x256xbf16>, vector<20x256xf32> -> vector<20x256xf32>
    %84 = vector.broadcast %13 : vector<20x1xf32> to vector<20x256xf32>
    %85 = arith.addf %83, %84 : vector<20x256xf32>
    %cst_39 = arith.constant 5.000000e-01 : f32
    %86 = vector.broadcast %cst_39 : f32 to vector<20x256xf32>
    %87 = arith.mulf %86, %85 : vector<20x256xf32>
    %cst_40 = arith.constant 4.471500e-02 : f32
    %88 = vector.broadcast %cst_40 : f32 to vector<20x256xf32>
    %89 = arith.mulf %88, %85 : vector<20x256xf32>
    %90 = arith.mulf %89, %85 : vector<20x256xf32>
    %91 = arith.mulf %90, %85 : vector<20x256xf32>
    %92 = arith.addf %85, %91 : vector<20x256xf32>
    %cst_41 = arith.constant 0.797884583 : f32
    %93 = vector.broadcast %cst_41 : f32 to vector<20x256xf32>
    %94 = arith.mulf %93, %92 : vector<20x256xf32>
    %95 = math.tanh %94 : vector<20x256xf32>
    %cst_42 = arith.constant 1.000000e+00 : f32
    %96 = vector.broadcast %cst_42 : f32 to vector<20x256xf32>
    %97 = arith.addf %96, %95 : vector<20x256xf32>
    %98 = arith.mulf %87, %97 : vector<20x256xf32>
    %99 = arith.truncf %7 : vector<1x20xf32> to vector<1x20xbf16>
    %100 = arith.truncf %98 : vector<20x256xf32> to vector<20x256xbf16>
    %cst_43 = arith.constant dense<0.000000e+00> : vector<1x256xf32>
    %101 = tpu.matmul %99, %100, %cst_43 {dimension_numbers = #tpu.dot_dimension_numbers<[1], [0], [0], [1], [0, 0, 1, 1], [], []>} : vector<1x20xbf16>, vector<20x256xbf16>, vector<1x256xf32> -> vector<1x256xf32>
    %102 = vector.broadcast %14 : vector<1x1xf32> to vector<1x256xf32>
    %103 = arith.addf %101, %102 : vector<1x256xf32>
    %c0_44 = arith.constant 0 : index
    %c0_45 = arith.constant 0 : index
    %c0_46 = arith.constant 0 : index
    %104 = vector.load %arg5[%c0_44, %c0_45, %c0_46] : memref<1x1x256xf32, #tpu.memory_space<vmem>>, vector<1x1x256xf32>
    %105 = vector.shape_cast %104 : vector<1x1x256xf32> to vector<1x256xf32>
    %106 = vector.shape_cast %103 : vector<1x256xf32> to vector<1x1x256xf32>
    tpu.vector_store %arg5[%c0_44, %c0_45, %c0_46], %106 {strides = array<i32>} : memref<1x1x256xf32, #tpu.memory_space<vmem>>, vector<1x1x256xf32>,
    return
  }
  func.func @transform_0(%arg0: i32) -> (i32, i32, i32) {
    %c0_i32 = arith.constant 0 : i32
    %c0_i32_0 = arith.constant 0 : i32
    %c0_i32_1 = arith.constant 0 : i32
    return %arg0, %c0_i32, %c0_i32_0 : i32, i32, i32
  }
  func.func @transform_1(%arg0: i32) -> (i32, i32) {
    %c0_i32 = arith.constant 0 : i32
    %c0_i32_0 = arith.constant 0 : i32
    %c0_i32_1 = arith.constant 0 : i32
    return %c0_i32, %c0_i32_0 : i32, i32
  }
  func.func @transform_2(%arg0: i32) -> (i32, i32) {
    %c0_i32 = arith.constant 0 : i32
    %c0_i32_0 = arith.constant 0 : i32
    %c0_i32_1 = arith.constant 0 : i32
    return %c0_i32, %c0_i32_0 : i32, i32
  }
  func.func @transform_3(%arg0: i32) -> (i32, i32) {
    %c0_i32 = arith.constant 0 : i32
    %c0_i32_0 = arith.constant 0 : i32
    %c0_i32_1 = arith.constant 0 : i32
    return %c0_i32, %c0_i32_0 : i32, i32
  }
  func.func @transform_4(%arg0: i32) -> (i32, i32, i32) {
    %c0_i32 = arith.constant 0 : i32
    %c0_i32_0 = arith.constant 0 : i32
    %c0_i32_1 = arith.constant 0 : i32
    return %arg0, %c0_i32, %c0_i32_0 : i32, i32, i32
  }
}

</mosaic_0001>

<bundles_post_ra>
// kernel: myfno_forward.1
= control target key start
LH: loop header
LB: loop body
LE: loop exit
PB: predicated region body
PF: predicated region fallthrough
CT: control target
= control target key end

     0   :  { %s1889_s15 = smov 0   ;;  %s2313_s0 = inlined_call_operand.vmem [shape: f32[2,1,256], index: 0, kind: input, shape index: {}]   ;;  %s2314_s1 = inlined_call_operand.vmem [shape: f32[20,256], index: 1, kind: input, shape index: {}]   ;;  %s2315_s2 = inlined_call_operand.vmem [shape: f32[128,32], index: 2, kind: input, shape index: {}]   ;;  %s2316_s3 = inlined_call_operand.vmem [shape: f32[104,1], index: 3, kind: input, shape index: {}]   ;;  %s2317_s4 = inlined_call_operand.vmem [shape: f32[2,1,256], index: 4, kind: output, shape index: {}]  }
   0x1 LB: > { %s1777_s16 = sadd.s32 4294967295, %s1859_s15   ;;  %p1781_p0 = scmp.ge.s32.totalorder %s1859_s15, 1  ;;  %s1859_s15 = sphi %s1889_s15, %s14_s15  }
   0x2   : > { %p161_p1 = scmp.lt.s32.totalorder %s1859_s15, 3 }
   0x4   : > { %p162_p2 = pnand %p1781_p0, %p161_p1 }
   0x5   : > { %p185_p3 = scmp.lt.s32.totalorder (!%p162_p2), %s1777_s16, 1 }
   0x6   : > { %165 = sbr.rel (%p162_p2) target bundleno = 1810 (0x712), region = 36 }
   0xb   : > { %v196_v0 = vld [vmem:[%s2315_s2 + $0x10] sm:$0xf]  ;;  %v195_v1 = vld [vmem:[%s2315_s2 + $0x8] sm:$0xff]  ;;  %v1861_v2 = vmov 0   ;;  %v210_v3 = vld [vmem:[%s2316_s3] sm:$0xff]  ;;  %s2319_s16 = smov (!%p185_p3, %s1777_s16), 1  ;;  %v225_v6 = vlaneseq }
   0xc   : > { %1824 = vset.pattern.permute.xlu1 %v1861_v2  ;;  %1823 = vset.pattern.permute.xlu0 %v1861_v2  ;;  %v194_v4 = vld [vmem:[%s2315_s2] sm:$0xff]  ;;  %v211_v5 = vld [vmem:[%s2316_s3 + $0x8] sm:$0x3]  ;;  %s1782_s27 = sshll.u32 %s2319_s16, 1  ;;  %v258_v16 = vld [vmem:[%s2314_s1 + $0x10] sm:$0xff]  ;;  %vm341_vm0 = vcmask 1041408  }
   0xd   : > { %247 = vperm.xlu0 %1823, %v196_v0   ;;  %242 = vperm.xlu1 %1824, %v195_v1   ;;  %v1919_v7 = vshrl.u32 %v225_v6, 7  ;;  %s188_s30 = scalar_lea.vmem %s2313_s0, %s1782_s27  ;;  %v260_v13 = vld [vmem:[%s2314_s1 + $0x20] sm:$0xf]  ;;  %v261_v14 = vld [vmem:[%s2314_s1 + $0x28] sm:$0xf]  ;;  %v259_v17 = vld [vmem:[%s2314_s1 + $0x18] sm:$0xff]  ;;  %s192_s23 = scalar_lea.vmem %s2317_s4, %s1782_s27 }
   0xe   : > { %380 = vmatprep.mubr.bf16.mxu0 %v1861_v2  ;;  %v223_v10 = vld [vmem:[%s188_s30] sm:$0x3]  ;;  %v257_v28 = vld [vmem:[%s2314_s1 + $0x8] sm:$0xff]  ;;  %vm337_vm1 = vcmask 162816   ;;  %vm568_vm2 = vcmask 1040384   ;;  %vm653_vm3 = vcmask 80896  }
   0xf   : > { %v1927_v8 = vsub.s32 0, %v1919_v7  ;;  %v1930_v9 = vsub.s32 1, %v1919_v7  ;;  %v256_v27 = vld [vmem:[%s2314_s1] sm:$0xff]  ;;  %vm630_vm4 = vcmask 1041409   ;;  %vm633_vm5 = vcmask 1042434  }
  0x10   : > { %vm636_vm6 = vcmask 1043459   ;;  %vm639_vm7 = vcmask 1044484   ;;  %vm642_vm8 = vcmask 1045509   ;;  %vm645_vm9 = vcmask 1046534  }
  0x11   : > { %329 = vperm.xlu1 %1824, %v210_v3   ;;  %237 = vperm.xlu0 %1823, %v194_v4   ;;  %v228_v11 = vrot.slane %v223_v10, %v1927_v8  ;;  %v232_v12 = vrot.slane %v223_v10, %v1930_v9  ;;  %vm648_vm10 = vcmask 1047559   ;;  %vm900_vm11 = vcmask 1044480  }
  0x12   : > { %vm1342_vm12 = vcmask 1042432   ;;  %vm1338_vm13 = vcmask 39936   ;;  %vm1721_vm14 = vcmp.lt.s32.totalorder %v225_v6, 256 }
  0x15   : > { %334 = vperm.xlu0 %1823, %v211_v5  }
  0x88   : > { %v248_v15 = vpop.permute.xlu0 %247  ;;  %v243_v18 = vpop.permute.xlu1 %242 }
  0x89   : > { %v254_v19 = vmul.f32 %v248_v15, %v228_v11  ;;  %v255_v20 = vmul.f32 %v248_v15, %v232_v12  ;;  %v252_v21 = vmul.f32 %v243_v18, %v228_v11  ;;  %v253_v22 = vmul.f32 %v243_v18, %v232_v12 }
  0x8b   : > { %v266_v23 = vadd.f32 %v260_v13, %v254_v19  ;;  %v267_v24 = vadd.f32 %v261_v14, %v255_v20  ;;  %v1946_v25 = vadd.f32 %v258_v16, %v252_v21  ;;  %v265_v26 = vadd.f32 %v259_v17, %v253_v22 }
  0x8c   : > { %v238_v29 = vpop.permute.xlu0 %237 }
  0x8d   : > { %v276_v30 = vmul.f32 0.044715, %v1946_v25  ;;  %v277_v31 = vmul.f32 0.044715, %v265_v26  ;;  %v250_v32 = vmul.f32 %v238_v29, %v228_v11  ;;  %v251_v33 = vmul.f32 %v238_v29, %v232_v12 }
  0x8e   : > { %v279_v34 = vmul.f32 0.044715, %v267_v24  ;;  %v278_v35 = vmul.f32 0.044715, %v266_v23  ;;  %v273_v4 = vmul.f32 0.5, %v267_v24  ;;  %v272_v11 = vmul.f32 0.5, %v266_v23 }
  0x8f   : > { %v282_v36 = vmul.f32 %v276_v30, %v1946_v25  ;;  %v283_v37 = vmul.f32 %v277_v31, %v265_v26  ;;  %v262_v38 = vadd.f32 %v256_v27, %v250_v32  ;;  %v263_v39 = vadd.f32 %v257_v28, %v251_v33 }
  0x90   : > { %v285_v40 = vmul.f32 %v279_v34, %v267_v24  ;;  %v284_v41 = vmul.f32 %v278_v35, %v266_v23  ;;  %v271_v20 = vmul.f32 0.5, %v265_v26  ;;  %v270_v28 = vmul.f32 0.5, %v1946_v25 }
  0x91   : > { %v274_v42 = vmul.f32 0.044715, %v262_v38  ;;  %v275_v43 = vmul.f32 0.044715, %v263_v39  ;;  %v289_v44 = vmul.f32 %v283_v37, %v265_v26  ;;  %v288_v47 = vmul.f32 %v282_v36, %v1946_v25 }
  0x92   : > { %v291_v45 = vmul.f32 %v285_v40, %v267_v24  ;;  %v290_v46 = vmul.f32 %v284_v41, %v266_v23  ;;  %v269_v19 = vmul.f32 0.5, %v263_v39  ;;  %v268_v27 = vmul.f32 0.5, %v262_v38  ;;  %v330_v41 = vpop.permute.xlu1 %329 }
  0x93   : > { %v280_v48 = vmul.f32 %v274_v42, %v262_v38  ;;  %v281_v49 = vmul.f32 %v275_v43, %v263_v39  ;;  %v295_v50 = vadd.f32 %v289_v44, %v265_v26  ;;  %v294_v53 = vadd.f32 %v288_v47, %v1946_v25  ;;  %v197_v26 = vld [vmem:[%s2315_s2 + $0x18] sm:$0xff]  ;;  %v198_v25 = vld [vmem:[%s2315_s2 + $0x20] sm:$0x3] }
  0x94   : > { %v297_v51 = vadd.f32 %v291_v45, %v267_v24  ;;  %v296_v52 = vadd.f32 %v290_v46, %v266_v23  ;;  %v322_v36 = vpack.c.bf16 %v198_v25, %v197_v26  ;;  %v1862_v37 = vmov 1966171168   ;;  %v335_v46 = vpop.permute.xlu0 %334 }
  0x95   : > { %v287_v54 = vmul.f32 %v281_v49, %v263_v39  ;;  %v301_v55 = vmul.f32 0.7978846, %v295_v50  ;;  %v286_v56 = vmul.f32 %v280_v48, %v262_v38  ;;  %v300_v59 = vmul.f32 0.7978846, %v294_v53 }
  0x96   : > { %v303_v57 = vmul.f32 0.7978846, %v297_v51  ;;  %v302_v58 = vmul.f32 0.7978846, %v296_v52 }
  0x97   : > { %v293_v60 = vadd.f32 %v287_v54, %v263_v39  ;;  %1825 = vtanh.f32 %v301_v55  ;;  %v292_v61 = vadd.f32 %v286_v56, %v262_v38  ;;  %v398_v38 = vunpack.c.l.s4 %v1862_v37 }
  0x98   : > { %1827 = vtanh.f32 %v303_v57 }
  0x99   : > { %1829 = vtanh.f32 %v302_v58  ;;  %v299_v62 = vmul.f32 0.7978846, %v293_v60  ;;  %v298_v63 = vmul.f32 0.7978846, %v292_v61  ;;  %v399_v39 = vunpack.c.0.s8 %v398_v38 }
  0x9a   : > { %1831 = vtanh.f32 %v300_v59 }
  0x9b   : > { %1833 = vtanh.f32 %v299_v62  ;;  %v1970_v43 = vsub.s32 %v399_v39, %v1919_v7 }
  0x9c   : > { %1835 = vtanh.f32 %v298_v63 }
  0xa4   : > { %v1826_v0 = vpop.eup %1825 }
  0xa5   : > { %v1828_v1 = vpop.eup %1827  ;;  %v313_v13 = vadd.f32 1.0, %v1826_v0 }
  0xa6   : > { %v1830_v3 = vpop.eup %1829  ;;  %v315_v5 = vadd.f32 1.0, %v1828_v1 }
  0xa7   : > { %v1832_v10 = vpop.eup %1831  ;;  %v314_v12 = vadd.f32 1.0, %v1830_v3  ;;  %v319_v31 = vmul.f32 %v313_v13, %v271_v20 }
  0xa8   : > { %v1834_v14 = vpop.eup %1833  ;;  %v321_v15 = vmul.f32 %v315_v5, %v273_v4  ;;  %v312_v16 = vadd.f32 1.0, %v1832_v10 }
  0xa9   : > { %v1836_v17 = vpop.eup %1835  ;;  %v320_v18 = vmul.f32 %v314_v12, %v272_v11  ;;  %v311_v21 = vadd.f32 1.0, %v1834_v14 }
  0xaa   : > { %v326_v22 = vpack.c.bf16 %v321_v15, %v321_v15  ;;  %v310_v29 = vadd.f32 1.0, %v1836_v17  ;;  %v318_v32 = vmul.f32 %v312_v16, %v270_v28 }
  0xab   : > { %v325_v24 = vpack.c.bf16 %v320_v18, %v320_v18  ;;  %v317_v30 = vmul.f32 %v311_v21, %v269_v19 }
  0xac   : > { %1784 = vmatprep.subr.msk.bf16.mxu0 %vm341_vm0, %v326_v22  ;;  %v316_v23 = vmul.f32 %v310_v29, %v268_v27 }
  0xad   : > { %v343_v33 = vsel %vm341_vm0, %v325_v24, 0  ;;  %v324_v34 = vpack.c.bf16 %v319_v31, %v317_v30 }
  0xae   : > { %361 = vmatpush1.bf16.msra.mxu0 %v343_v33  ;;  %v323_v35 = vpack.c.bf16 %v318_v32, %v316_v23 }
  0xaf   : > { %362 = vmatprep.subr.bf16.mxu0 %v324_v34 }
  0xb2   : > { %363 = vmatpush1.bf16.msra.mxu0 %v323_v35 }
  0xb5   : > { %1785 = vmatmul.mubr.msk.bf16.vlgmr.msra.gmra.mxu0 %vm337_vm1, %v322_v36 }
  0xb6   : > { %1298 = vmatprep.mubr.bf16.mxu0 %v1861_v2 }
 0x175   : > { %v382_v40 = vpop.f32.mrf.mxu0 }
 0x176   : > { %v1972_v44 = vadd.f32 %v382_v40, %v330_v41 }
 0x177   : > { %v384_v42 = vpop.f32.mrf.mxu0 }
 0x178   : > { %v1974_v45 = vadd.f32 %v384_v42, %v330_v41 }
 0x179   : > { %v386_v47 = vpop.f32.mrf.mxu0 }
 0x17a   : > { %v395_v48 = vcombine.low %v1972_v44, %v1974_v45  ;;  %v396_v49 = vcombine.high %v1972_v44, %v1974_v45  ;;  %v1980_v50 = vadd.f32 %v386_v47, %v335_v46 }
 0x17b   : > { %v388_v51 = vpop.f32.mrf.mxu0 }
 0x17c   : > { %v403_v52 = vrot.slane %v395_v48, %v1970_v43  ;;  %v410_v7 = vrot.slane %v396_v49, %v1970_v43  ;;  %v895_v53 = vpack.c.bf16 %v1980_v50, %v1972_v44  ;;  %v1986_v54 = vadd.f32 %v388_v51, %v335_v46 }
 0x17e   : > { %v411_v55 = vcombine.high %v403_v52, %v403_v52  ;;  %v412_v56 = vcombine.high %v410_v7, %v410_v7  ;;  %v445_v57 = vcombine.low %v1980_v50, %v1986_v54  ;;  %v896_v58 = vpack.c.bf16 %v1986_v54, %v1974_v45  ;;  %v212_v45 = vld [vmem:[%s2316_s3 + $0x10] sm:$0xff] }
 0x17f   : > { %v419_v59 = vrot.slane %v403_v52, %v1970_v43  ;;  %v426_v60 = vrot.slane %v410_v7, %v1970_v43 }
 0x180   : > { %v452_v61 = vrot.slane %v445_v57, %v1970_v43  ;;  %v433_v62 = vrot.slane %v411_v55, %v1970_v43  ;;  %v440_v63 = vrot.slane %v412_v56, %v1970_v43 }
 0x181   : > { %v471_v0 = vrot.slane %v419_v59, %v1927_v8  ;;  %v475_v1 = vrot.slane %v419_v59, %v1930_v9  ;;  %v503_v3 = vrot.slane %v426_v60, %v1927_v8  ;;  %v507_v4 = vrot.slane %v426_v60, %v1930_v9 }
 0x182   : > { %v453_v5 = vcombine.high %v452_v61, %v452_v61  ;;  %v479_v10 = vrot.slane %v433_v62, %v1927_v8  ;;  %v483_v11 = vrot.slane %v433_v62, %v1930_v9  ;;  %v511_v12 = vrot.slane %v440_v63, %v1927_v8 }
 0x183   : > { %v569_v13 = vsel %vm568_vm2, %v471_v0, 0.0  ;;  %v570_v14 = vsel %vm568_vm2, %v475_v1, 0.0  ;;  %v589_v15 = vsel %vm568_vm2, %v503_v3, 0.0  ;;  %v590_v19 = vsel %vm568_vm2, %v507_v4, 0.0 }
 0x184   : > { %v571_v16 = vadd.f32 %v570_v14, %v569_v13  ;;  %v574_v17 = vsel %vm568_vm2, %v479_v10, 0.0  ;;  %v575_v18 = vsel %vm568_vm2, %v483_v11, 0.0  ;;  %v515_v21 = vrot.slane %v440_v63, %v1930_v9 }
 0x185   : > { %v576_v20 = vadd.f32 %v575_v18, %v574_v17  ;;  %v441_v22 = vcombine.high %v419_v59, %v419_v59  ;;  %v594_v27 = vsel %vm568_vm2, %v511_v12, 0.0  ;;  %v442_v28 = vcombine.high %v426_v60, %v426_v60 }
 0x186   : > { %572 = vadd.xlane.f32.xlu0 %v571_v16  ;;  %v467_v29 = vrot.slane %v453_v5, %v1970_v43  ;;  %v443_v24 = vcombine.high %v433_v62, %v433_v62  ;;  %v591_v30 = vadd.f32 %v590_v19, %v589_v15  ;;  %v595_v31 = vsel %vm568_vm2, %v515_v21, 0.0  ;;  %v199_v5 = vld [vmem:[%s2315_s2 + $0x28] sm:$0xff] }
 0x187   : > { %577 = vadd.xlane.f32.xlu1 %v576_v20  ;;  %v487_v23 = vrot.slane %v441_v22, %v1927_v8  ;;  %v491_v32 = vrot.slane %v441_v22, %v1930_v9  ;;  %v519_v33 = vrot.slane %v442_v28, %v1927_v8  ;;  %v523_v34 = vrot.slane %v442_v28, %v1930_v9 }
 0x188   : > { %v543_v35 = vrot.slane %v467_v29, %v1927_v8  ;;  %v444_v26 = vcombine.high %v440_v63, %v440_v63  ;;  %v596_v25 = vadd.f32 %v595_v31, %v594_v27  ;;  %v547_v38 = vrot.slane %v467_v29, %v1930_v9  ;;  %1809 = vmatprep.mubr.msk.f32.mxu1 %vm653_vm3, %v199_v5  ;;  %v218_v5 = vld [vmem:[%s2316_s3 + $0x40] sm:$0x3] }
 0x189   : > { %v579_v36 = vsel %vm568_vm2, %v487_v23, 0.0  ;;  %v580_v37 = vsel %vm568_vm2, %v491_v32, 0.0  ;;  %v599_v39 = vsel %vm568_vm2, %v519_v33, 0.0  ;;  %v600_v40 = vsel %vm568_vm2, %v523_v34, 0.0 }
 0x18a   : > { %592 = vadd.xlane.f32.xlu0 %v591_v30  ;;  %v495_v41 = vrot.slane %v443_v24, %v1927_v8  ;;  %v460_v42 = vrot.slane %v452_v61, %v1970_v43  ;;  %v499_v46 = vrot.slane %v443_v24, %v1930_v9  ;;  %v581_v47 = vadd.f32 %v580_v37, %v579_v36  ;;  %v200_v36 = vld [vmem:[%s2315_s2 + $0x30] sm:$0x3]  ;;  %v201_v37 = vld [vmem:[%s2315_s2 + $0x38] sm:$0xff] }
 0x18b   : > { %597 = vadd.xlane.f32.xlu1 %v596_v25  ;;  %v614_v48 = vsel %vm568_vm2, %v543_v35, 0.0  ;;  %v601_v49 = vadd.f32 %v600_v40, %v599_v39  ;;  %v615_v51 = vsel %vm568_vm2, %v547_v38, 0.0  ;;  %v527_v52 = vrot.slane %v444_v26, %v1927_v8  ;;  %v202_v38 = vld [vmem:[%s2315_s2 + $0x40] sm:$0x3] }
 0x18c   : > { %v531_v7 = vrot.slane %v444_v26, %v1930_v9  ;;  %v584_v55 = vsel %vm568_vm2, %v495_v41, 0.0  ;;  %v585_v56 = vsel %vm568_vm2, %v499_v46, 0.0  ;;  %v535_v57 = vrot.slane %v460_v42, %v1927_v8 }
 0x18d   : > { %v539_v59 = vrot.slane %v460_v42, %v1930_v9  ;;  %v616_v60 = vadd.f32 %v615_v51, %v614_v48  ;;  %v586_v61 = vadd.f32 %v585_v56, %v584_v55  ;;  %v604_v62 = vsel %vm568_vm2, %v527_v52, 0.0  ;;  %v213_v48 = vld [vmem:[%s2316_s3 + $0x18] sm:$0x3] }
 0x18e   : > { %582 = vadd.xlane.f32.xlu0 %v581_v47  ;;  %v605_v63 = vsel %vm568_vm2, %v531_v7, 0.0  ;;  %v609_v0 = vsel %vm568_vm2, %v535_v57, 0.0  ;;  %v902_v39 = vsel %vm900_vm11, %v895_v53, 0  ;;  %v894_v40 = vpack.c.bf16 %v202_v38, %v201_v37 }
 0x18f   : > { %602 = vadd.xlane.f32.xlu1 %v601_v49  ;;  %v610_v1 = vsel %vm568_vm2, %v539_v59, 0.0  ;;  %v606_v3 = vadd.f32 %v605_v63, %v604_v62 }
 0x190   : > { %v611_v4 = vadd.f32 %v610_v1, %v609_v0 }
 0x192   : > { %617 = vadd.xlane.f32.xlu0 %v616_v60 }
 0x193   : > { %587 = vadd.xlane.f32.xlu1 %v586_v61 }
 0x196   : > { %607 = vadd.xlane.f32.xlu0 %v606_v3  ;;  %v216_v3 = vld [vmem:[%s2316_s3 + $0x30] sm:$0x1f] }
 0x197   : > { %612 = vadd.xlane.f32.xlu1 %v611_v4  ;;  %v217_v4 = vld [vmem:[%s2316_s3 + $0x38] sm:$0xff] }
 0x20f   : > { %v573_v10 = vpop.xlane.xlu0 %572 }
 0x210   : > { %v578_v11 = vpop.xlane.xlu1 %577 }
 0x211   : > { %v629_v16 = vrot.slane %v578_v11, 7  ;;  %v215_v11 = vld [vmem:[%s2316_s3 + $0x28] sm:$0x3] }
 0x213   : > { %v593_v12 = vpop.xlane.xlu0 %592  ;;  %v631_v20 = vsel %vm630_vm4, %v629_v16, %v573_v10  ;;  %v214_v10 = vld [vmem:[%s2316_s3 + $0x20] sm:$0xff] }
 0x214   : > { %v598_v13 = vpop.xlane.xlu1 %597  ;;  %v638_v22 = vrot.slane %v593_v12, 4  ;;  %v221_v12 = vld [vmem:[%s2316_s3 + $0x58] sm:$0xf] }
 0x215   : > { %v641_v28 = vrot.slane %v598_v13, 3  ;;  %v219_v13 = vld [vmem:[%s2316_s3 + $0x48] sm:$0xff] }
 0x217   : > { %v583_v14 = vpop.xlane.xlu0 %582 }
 0x218   : > { %v603_v15 = vpop.xlane.xlu1 %602  ;;  %v632_v17 = vrot.slane %v583_v14, 6  ;;  %v220_v14 = vld [vmem:[%s2316_s3 + $0x50] sm:$0xff] }
 0x219   : > { %v644_v31 = vrot.slane %v603_v15, 2  ;;  %v222_v15 = vld [vmem:[%s2316_s3 + $0x60] sm:$0x1] }
 0x21a   : > { %v634_v27 = vsel %vm633_vm5, %v632_v17, %v631_v20 }
 0x21b   : > { %v618_v18 = vpop.xlane.xlu0 %617 }
 0x21c   : > { %v588_v19 = vpop.xlane.xlu1 %587  ;;  %v650_v29 = vrot.slane %v618_v18, 7 }
 0x21d   : > { %v635_v21 = vrot.slane %v588_v19, 5 }
 0x21f   : > { %v637_v24 = vsel %vm636_vm6, %v635_v21, %v634_v27  ;;  %v608_v30 = vpop.xlane.xlu0 %607 }
 0x220   : > { %v640_v23 = vsel %vm639_vm7, %v638_v22, %v637_v24  ;;  %v613_v32 = vpop.xlane.xlu1 %612  ;;  %v647_v33 = vrot.slane %v608_v30, 1 }
 0x221   : > { %v651_v34 = vsel %vm630_vm4, %v650_v29, %v613_v32  ;;  %v643_v35 = vsel %vm642_vm8, %v641_v28, %v640_v23 }
 0x222   : > { %1805 = vmatprep.subr.msk.mxu1 %vm341_vm0, %v651_v34  ;;  %v646_v26 = vsel %vm645_vm9, %v644_v31, %v643_v35 }
 0x223   : > { %1806 = vmatpush3.msk.msra.mxu1 %vm341_vm0, %v651_v34  ;;  %v649_v25 = vsel %vm648_vm10, %v647_v33, %v646_v26 }
 0x224   : > { %1807 = vmatprep.subr.mxu1 %v649_v25 }
 0x225   : > { %1808 = vmatpush3.msra.mxu1 %v649_v25 }
 0x226   : > { %1810 = vmatmul.mubr.msk.f32.vlgmr.msra.gmra.mxu1 %vm653_vm3, %v200_v36  ;;  %1789 = vmatprep.subr.msk.bf16.mxu1 %vm900_vm11, %v896_v58 }
 0x227   : > { %922 = vmatpush1.bf16.msra.mxu1 %v902_v39  ;;  %939 = vmatprep.mubr.bf16.mxu1 %v1861_v2 }
 0x22a   : > { %1790 = vmatmul.mubr.msk.bf16.vlgmr.msra.gmra.mxu1 %vm653_vm3, %v894_v40 }
 0x22b   : > { %1383 = vmatprep.mubr.bf16.mxu1 %v1861_v2 }
 0x2e6   : > { %v1811_v41 = vpop.f32.mrf.mxu1 }
 0x2e7   : > { %v738_v50 = vmul.f32 0.00390625, %v1811_v41 }
 0x2e8   : > { %v728_v54 = vpop.f32.mrf.mxu1 }
 0x2e9   : > { %v737_v58 = vmul.f32 0.00390625, %v728_v54  ;;  %v740_v52 = vadd.f32 %v738_v50, %v213_v48 }
 0x2ea   : > { %v941_v16 = vpop.f32.mrf.mxu1 }
 0x2eb   : > { %v739_v42 = vadd.f32 %v737_v58, %v212_v45  ;;  %v798_v57 = vrot.slane %v740_v52, %v1970_v43 }
 0x2ec   : > { %v943_v17 = vpop.f32.mrf.mxu1 }
 0x2ed   : > { %v743_v46 = vcombine.high %v739_v42, %v739_v42  ;;  %v750_v44 = vrot.slane %v739_v42, %v1970_v43  ;;  %v799_v62 = vcombine.high %v798_v57, %v798_v57  ;;  %v806_v1 = vrot.slane %v798_v57, %v1970_v43 }
 0x2ee   : > { %v954_v18 = vcombine.low %v941_v16, %v943_v17  ;;  %v945_v19 = vpop.f32.mrf.mxu1  ;;  %v955_v22 = vcombine.high %v941_v16, %v943_v17 }
 0x2ef   : > { %v766_v53 = vrot.slane %v750_v44, %v1970_v43  ;;  %v758_v47 = vcombine.high %v750_v44, %v750_v44  ;;  %v757_v51 = vrot.slane %v743_v46, %v1970_v43  ;;  %v813_v0 = vrot.slane %v799_v62, %v1970_v43 }
 0x2f0   : > { %v962_v20 = vrot.slane %v954_v18, %v1970_v43  ;;  %v947_v21 = vpop.f32.mrf.mxu1  ;;  %v969_v29 = vrot.slane %v955_v22, %v1970_v43 }
 0x2f1   : > { %815 = vperm.xlu1 %1824, %v766_v53   ;;  %v780_v49 = vrot.slane %v758_v47, %v1970_v43  ;;  %v788_v7 = vcombine.high %v766_v53, %v766_v53  ;;  %v759_v56 = vcombine.high %v757_v51, %v757_v51  ;;  %v773_v59 = vrot.slane %v757_v51, %v1970_v43 }
 0x2f2   : > { %v1004_v27 = vcombine.low %v945_v19, %v947_v21  ;;  %v970_v28 = vcombine.high %v962_v20, %v962_v20  ;;  %v978_v24 = vrot.slane %v962_v20, %v1970_v43  ;;  %v971_v33 = vcombine.high %v969_v29, %v969_v29 }
 0x2f3   : > { %823 = vperm.xlu0 %1823, %v780_v49   ;;  %v790_v55 = vcombine.high %v780_v49, %v780_v49  ;;  %v787_v60 = vrot.slane %v759_v56, %v1970_v43  ;;  %v789_v61 = vcombine.high %v773_v59, %v773_v59  ;;  %v2130_v38 = vrot.slane %v969_v29, %v1970_v43 }
 0x2f4   : > { %v2120_v31 = vrot.slane %v1004_v27, %v1970_v43  ;;  %v992_v32 = vrot.slane %v970_v28, %v1970_v43  ;;  %v1000_v36 = vcombine.high %v978_v24, %v978_v24  ;;  %v2140_v42 = vrot.slane %v971_v33, %v1970_v43 }
 0x2f5   : > { %831 = vperm.xlu1 %1824, %v788_v7   ;;  %v791_v63 = vcombine.high %v787_v60, %v787_v60  ;;  %v1001_v7 = vcombine.high %v2130_v38, %v2130_v38 }
 0x2f6   : > { %v1012_v25 = vcombine.high %v2120_v31, %v2120_v31  ;;  %v1002_v54 = vcombine.high %v992_v32, %v992_v32  ;;  %v1019_v46 = vrot.slane %v2120_v31, %v1970_v43 }
 0x2f7   : > { %839 = vperm.xlu0 %1823, %v790_v55  }
 0x2f9   : > { %847 = vperm.xlu1 %1824, %v773_v59   ;;  %v2156_v59 = vrot.slane %v1012_v25, %v1970_v43 }
 0x2fb   : > { %855 = vperm.xlu0 %1823, %v787_v60  }
 0x2fd   : > { %863 = vperm.xlu1 %1824, %v789_v61  }
 0x2ff   : > { %871 = vperm.xlu0 %1823, %v791_v63  }
 0x301   : > { %887 = vperm.xlu1 %1824, %v813_v0  }
 0x303   : > { %879 = vperm.xlu0 %1823, %v806_v1  }
 0x305   : > { %1180 = vperm.xlu1 %1824, %v216_v3  }
 0x307   : > { %1330 = vperm.xlu0 %1823, %v217_v4  }
 0x309   : > { %1335 = vperm.xlu1 %1824, %v218_v5  }
 0x30b   : > { %1396 = vperm.xlu0 %1823, %v214_v10  }
 0x30d   : > { %1401 = vperm.xlu1 %1824, %v215_v11  }
 0x30f   : > { %1521 = vperm.xlu0 %1823, %v221_v12  }
 0x311   : > { %1511 = vperm.xlu1 %1824, %v219_v13  }
 0x313   : > { %1516 = vperm.xlu0 %1823, %v220_v14  }
 0x315   : > { %1648 = vperm.xlu1 %1824, %v222_v15  }
 0x36c   : > { %v816_v30 = vpop.permute.xlu1 %815 }
 0x36d   : > { %v821_v23 = vrot.slane %v816_v30, %v1927_v8 }
 0x36e   : > { %v824_v34 = vpop.permute.xlu0 %823 }
 0x36f   : > { %v2124_v35 = vadd.f32 %v978_v24, %v821_v23  ;;  %v829_v26 = vrot.slane %v824_v34, %v1927_v8  ;;  %v1003_v24 = vcombine.high %v2140_v42, %v2140_v42 }
 0x370   : > { %v832_v37 = vpop.permute.xlu1 %831 }
 0x371   : > { %v1061_v39 = vrot.slane %v2124_v35, %v1927_v8  ;;  %v1065_v40 = vrot.slane %v2124_v35, %v1930_v9  ;;  %v2136_v41 = vadd.f32 %v992_v32, %v829_v26  ;;  %v837_v45 = vrot.slane %v832_v37, %v1927_v8 }
 0x372   : > { %v840_v58 = vpop.permute.xlu0 %839 }
 0x373   : > { %v1158_v44 = vpack.c.bf16 %v1061_v39, %v1061_v39  ;;  %v1159_v50 = vpack.c.bf16 %v1065_v40, %v1065_v40  ;;  %v1069_v53 = vrot.slane %v2136_v41, %v1927_v8  ;;  %v1073_v47 = vrot.slane %v2136_v41, %v1930_v9 }
 0x374   : > { %v1404_v48 = vcombine.low %v2124_v35, %v2136_v41  ;;  %v2150_v49 = vadd.f32 %v1000_v36, %v837_v45  ;;  %v845_v51 = vrot.slane %v840_v58, %v1927_v8  ;;  %v848_v52 = vpop.permute.xlu1 %847 }
 0x375   : > { %v1203_v55 = vunpack.c.l.b16 %v1158_v44  ;;  %v1160_v56 = vpack.c.bf16 %v1069_v53, %v1069_v53  ;;  %v1161_v57 = vpack.c.bf16 %v1073_v47, %v1073_v47  ;;  %v1204_v60 = vunpack.c.l.b16 %v1159_v50 }
 0x376   : > { %v1077_v61 = vrot.slane %v2150_v49, %v1927_v8  ;;  %v1081_v62 = vrot.slane %v2150_v49, %v1930_v9  ;;  %v1040_v63 = vadd.f32 %v1002_v54, %v845_v51  ;;  %v856_v0 = vpop.permute.xlu0 %855  ;;  %v853_v4 = vrot.slane %v848_v52, %v1927_v8 }
 0x377   : > { %v1205_v1 = vunpack.c.l.b16 %v1160_v56  ;;  %v1206_v3 = vunpack.c.l.b16 %v1161_v57  ;;  %v861_v5 = vrot.slane %v856_v0, %v1927_v8  ;;  %v2181_v44 = vrot.slane %v1404_v48, %v1970_v43 }
 0x378   : > { %v1162_v10 = vpack.c.bf16 %v1077_v61, %v1077_v61  ;;  %v1163_v11 = vpack.c.bf16 %v1081_v62, %v1081_v62  ;;  %v1085_v12 = vrot.slane %v1040_v63, %v1927_v8  ;;  %v1089_v13 = vrot.slane %v1040_v63, %v1930_v9  ;;  %v864_v22 = vpop.permute.xlu1 %863 }
 0x379   : > { %v1223_v14 = vrot.slane %v1205_v1, 7  ;;  %v1237_v15 = vrot.slane %v1206_v3, 7  ;;  %v1405_v16 = vcombine.low %v2150_v49, %v1040_v63  ;;  %v1041_v17 = vadd.f32 %v2130_v38, %v853_v4 }
 0x37a   : > { %v1207_v18 = vunpack.c.l.b16 %v1162_v10  ;;  %v1208_v19 = vunpack.c.l.b16 %v1163_v11  ;;  %v1164_v20 = vpack.c.bf16 %v1085_v12, %v1085_v12  ;;  %v1165_v21 = vpack.c.bf16 %v1089_v13, %v1089_v13  ;;  %v872_v34 = vpop.permute.xlu0 %871 }
 0x37b   : > { %v1224_v27 = vsel %vm630_vm4, %v1223_v14, %v1203_v55  ;;  %v1238_v28 = vsel %vm630_vm4, %v1237_v15, %v1204_v60  ;;  %v1093_v29 = vrot.slane %v1041_v17, %v1927_v8  ;;  %v1097_v35 = vrot.slane %v1041_v17, %v1930_v9 }
 0x37c   : > { %v1225_v30 = vrot.slane %v1207_v18, 6  ;;  %v1239_v23 = vrot.slane %v1208_v19, 6  ;;  %v1209_v32 = vunpack.c.l.b16 %v1164_v20  ;;  %v1210_v33 = vunpack.c.l.b16 %v1165_v21  ;;  %v888_v55 = vpop.permute.xlu1 %887 }
 0x37d   : > { %v1166_v26 = vpack.c.bf16 %v1093_v29, %v1093_v29  ;;  %v1042_v25 = vadd.f32 %v2140_v42, %v861_v5  ;;  %v869_v36 = vrot.slane %v864_v22, %v1927_v8  ;;  %v1167_v41 = vpack.c.bf16 %v1097_v35, %v1097_v35 }
 0x37e   : > { %v1226_v37 = vsel %vm633_vm5, %v1225_v30, %v1224_v27  ;;  %v1240_v38 = vsel %vm633_vm5, %v1239_v23, %v1238_v28  ;;  %v1227_v39 = vrot.slane %v1209_v32, 5  ;;  %v1241_v40 = vrot.slane %v1210_v33, 5  ;;  %v880_v62 = vpop.permute.xlu0 %879 }
 0x37f   : > { %v1211_v45 = vunpack.c.l.b16 %v1166_v26  ;;  %v1101_v54 = vrot.slane %v1042_v25, %v1927_v8  ;;  %v1105_v58 = vrot.slane %v1042_v25, %v1930_v9  ;;  %v1406_v42 = vcombine.low %v1041_v17, %v1042_v25 }
 0x380   : > { %v1228_v50 = vsel %vm636_vm6, %v1227_v39, %v1226_v37  ;;  %v1043_v53 = vadd.f32 %v1001_v7, %v869_v36  ;;  %v1212_v47 = vunpack.c.l.b16 %v1167_v41  ;;  %v1242_v56 = vsel %vm636_vm6, %v1241_v40, %v1240_v38 }
 0x381   : > { %v1229_v49 = vrot.slane %v1211_v45, 4  ;;  %v1168_v51 = vpack.c.bf16 %v1101_v54, %v1101_v54  ;;  %v1169_v52 = vpack.c.bf16 %v1105_v58, %v1105_v58  ;;  %v877_v61 = vrot.slane %v872_v34, %v1927_v8 }
 0x382   : > { %v1109_v57 = vrot.slane %v1043_v53, %v1927_v8  ;;  %v1113_v60 = vrot.slane %v1043_v53, %v1930_v9  ;;  %v1421_v48 = vrot.slane %v1405_v16, %v1970_v43  ;;  %v1243_v63 = vrot.slane %v1212_v47, 4 }
 0x383   : > { %v1213_v0 = vunpack.c.l.b16 %v1168_v51  ;;  %v1214_v1 = vunpack.c.l.b16 %v1169_v52  ;;  %v1044_v4 = vadd.f32 %v1003_v24, %v877_v61  ;;  %v893_v5 = vrot.slane %v888_v55, %v1927_v8 }
 0x384   : > { %v1170_v7 = vpack.c.bf16 %v1109_v57, %v1109_v57  ;;  %v1171_v3 = vpack.c.bf16 %v1113_v60, %v1113_v60  ;;  %v1230_v10 = vsel %vm639_vm7, %v1229_v49, %v1228_v50  ;;  %v1244_v11 = vsel %vm639_vm7, %v1243_v63, %v1242_v56 }
 0x385   : > { %v1428_v12 = vrot.slane %v1406_v42, %v1970_v43  ;;  %v885_v13 = vrot.slane %v880_v62, %v1927_v8  ;;  %v1231_v14 = vrot.slane %v1213_v0, 3  ;;  %v1245_v15 = vrot.slane %v1214_v1, 3  ;;  %v203_v1 = vld [vmem:[%s2315_s2 + $0x48] sm:$0x1f] }
 0x386   : > { %v1117_v16 = vrot.slane %v1044_v4, %v1927_v8  ;;  %v1121_v17 = vrot.slane %v1044_v4, %v1930_v9  ;;  %v1407_v18 = vcombine.low %v1043_v53, %v1044_v4  ;;  %v2197_v19 = vadd.f32 %v2156_v59, %v893_v5  ;;  %v1181_v5 = vpop.permute.xlu1 %1180 }
 0x387   : > { %v2202_v20 = vadd.f32 %v1019_v46, %v885_v13  ;;  %v1436_v21 = vcombine.low %v2181_v44, %v1421_v48  ;;  %v1215_v22 = vunpack.c.l.b16 %v1170_v7  ;;  %v1216_v27 = vunpack.c.l.b16 %v1171_v3 }
 0x388   : > { %v1172_v28 = vpack.c.bf16 %v1117_v16, %v1117_v16  ;;  %v1173_v29 = vpack.c.bf16 %v1121_v17, %v1121_v17  ;;  %v1435_v24 = vrot.slane %v1407_v18, %v1970_v43  ;;  %v1133_v30 = vrot.slane %v2197_v19, %v1927_v8 }
 0x389   : > { %v1137_v59 = vrot.slane %v2197_v19, %v1930_v9  ;;  %v1125_v23 = vrot.slane %v2202_v20, %v1927_v8  ;;  %v1129_v32 = vrot.slane %v2202_v20, %v1930_v9  ;;  %v1470_v33 = vcombine.low %v2202_v20, %v2197_v19 }
 0x38a   : > { %v1217_v31 = vunpack.c.l.b16 %v1172_v28  ;;  %v1218_v46 = vunpack.c.l.b16 %v1173_v29  ;;  %v1176_v34 = vpack.c.bf16 %v1133_v30, %v1133_v30  ;;  %v1437_v25 = vcombine.high %v2181_v44, %v1421_v48 }
 0x38b   : > { %v1177_v35 = vpack.c.bf16 %v1137_v59, %v1137_v59  ;;  %v1174_v26 = vpack.c.bf16 %v1125_v23, %v1125_v23  ;;  %v1233_v36 = vrot.slane %v1215_v22, 2  ;;  %v1247_v37 = vrot.slane %v1216_v27, 2 }
 0x38c   : > { %v1175_v38 = vpack.c.bf16 %v1129_v32, %v1129_v32  ;;  %v1438_v39 = vcombine.low %v1428_v12, %v1435_v24  ;;  %v1235_v40 = vrot.slane %v1217_v31, 1  ;;  %v1221_v41 = vunpack.c.l.b16 %v1176_v34 }
 0x38d   : > { %v1222_v8 = vunpack.c.l.b16 %v1177_v35  ;;  %v1439_v45 = vcombine.high %v1428_v12, %v1435_v24  ;;  %v1249_v54 = vrot.slane %v1218_v46, 1  ;;  %v2218_v9 = vrot.slane %v1436_v21, %v1970_v43 }
 0x38e   : > { %v1220_v58 = vunpack.c.l.b16 %v1175_v38  ;;  %v2221_v50 = vrot.slane %v1438_v39, %v1970_v43  ;;  %v1219_v53 = vunpack.c.l.b16 %v1174_v26  ;;  %v2224_v44 = vrot.slane %v1437_v25, %v1970_v43 }
 0x38f   : > { %v1253_v42 = vrot.slane %v1222_v8, 7  ;;  %v2227_v47 = vrot.slane %v1439_v45, %v1970_v43  ;;  %v1251_v49 = vrot.slane %v1221_v41, 7  ;;  %v1246_v52 = vsel %vm642_vm8, %v1245_v15, %v1244_v11  ;;  %v205_v41 = vld [vmem:[%s2315_s2 + $0x58] sm:$0x3] }
 0x390   : > { %v1468_v51 = vcombine.low %v2218_v9, %v2221_v50  ;;  %v1232_v55 = vsel %vm642_vm8, %v1231_v14, %v1230_v10  ;;  %v1248_v57 = vsel %vm645_vm9, %v1247_v37, %v1246_v52  ;;  %v1047_v4 = vpack.c.bf16 %v203_v1, %v203_v1  ;;  %v206_v9 = vld [vmem:[%s2315_s2 + $0x60] sm:$0xff]  ;;  %v207_v50 = vld [vmem:[%s2315_s2 + $0x68] sm:$0xff] }
 0x391   : > { %v1469_v56 = vcombine.low %v2224_v44, %v2227_v47  ;;  %v1250_v60 = vsel %vm648_vm10, %v1249_v54, %v1248_v57  ;;  %v1254_v61 = vsel %vm630_vm4, %v1253_v42, %v1220_v58  ;;  %v1234_v62 = vsel %vm645_vm9, %v1233_v36, %v1232_v55  ;;  %v1336_v42 = vpop.permute.xlu1 %1335 }
 0x392   : > { %v1256_v48 = vpack.c.b16 %v1254_v61, %v1250_v60  ;;  %v1236_v63 = vsel %vm648_vm10, %v1235_v40, %v1234_v62  ;;  %v1252_v0 = vsel %vm630_vm4, %v1251_v49, %v1219_v53  ;;  %v1863_v26 = vmov 65535   ;;  %v204_v40 = vld [vmem:[%s2315_s2 + $0x50] sm:$0xff]  ;;  %v1331_v53 = vpop.permute.xlu0 %1330 }
 0x393   : > { %v1255_v7 = vpack.c.b16 %v1252_v0, %v1236_v63  ;;  %v1343_v25 = vsel %vm341_vm0, 4294967295, %v1863_v26  ;;  %v1325_v54 = vpack.c.bf16 %v205_v41, %v204_v40  ;;  %v1477_v58 = vrot.slane %v1470_v33, %v1970_v43 }
 0x394   : > { %1791 = vmatprep.subr.msk.bf16.mxu0 %vm900_vm11, %v1256_v48  ;;  %v1344_v39 = vsel %vm1342_vm12, %v1343_v25, 0  ;;  %v1505_v47 = vpack.c.bf16 %v207_v50, %v206_v9 }
 0x395   : > { %v1261_v3 = vsel %vm900_vm11, %v1255_v7, 0  ;;  %v1478_v49 = vcombine.high %v1477_v58, %v1477_v58  ;;  %v1485_v55 = vrot.slane %v1477_v58, %v1970_v43  ;;  %v1402_v57 = vpop.permute.xlu1 %1401 }
 0x396   : > { %1281 = vmatpush1.bf16.msra.mxu0 %v1261_v3  ;;  %v1397_v48 = vpop.permute.xlu0 %1396 }
 0x397   : > { %v1492_v61 = vrot.slane %v1478_v49, %v1970_v43  ;;  %v1497_v0 = vmul.f32 %v1468_v51, %v1397_v48  ;;  %v1499_v1 = vmul.f32 %v1485_v55, %v1402_v57  ;;  %v1498_v33 = vmul.f32 %v1469_v56, %v1397_v48  ;;  %v208_v56 = vld [vmem:[%s2315_s2 + $0x70] sm:$0xf] }
 0x399   : > { %1792 = vmatmul.mubr.msk.bf16.vlgmr.msra.gmra.mxu0 %vm653_vm3, %v1047_v4  ;;  %v1500_v3 = vmul.f32 %v1492_v61, %v1402_v57 }
 0x39a   : > { %1568 = vmatprep.mubr.bf16.mxu0 %v1861_v2 }
 0x459   : > { %v1300_v10 = vpop.f32.mrf.mxu0 }
 0x45a   : > { %v1301_v11 = vadd.f32 %v1300_v10, %v1181_v5 }
 0x45b   : > { %v1302_v12 = vpop.f32.mrf.mxu0 }
 0x45c   : > { %v1309_v13 = vmul.f32 0.044715, %v1301_v11  ;;  %v1303_v14 = vadd.f32 %v1302_v12, %v1181_v5  ;;  %v1307_v23 = vmul.f32 0.5, %v1301_v11 }
 0x45d   : > { %v1304_v15 = vpop.f32.mrf.mxu0 }
 0x45e   : > { %v1311_v16 = vmul.f32 %v1309_v13, %v1301_v11  ;;  %v1310_v17 = vmul.f32 0.044715, %v1303_v14  ;;  %v1308_v32 = vmul.f32 0.5, %v1303_v14  ;;  %v1522_v15 = vpop.permute.xlu0 %1521 }
 0x45f   : > { %v1305_v18 = vpop.f32.mrf.mxu0 }
 0x460   : > { %v1313_v21 = vmul.f32 %v1311_v16, %v1301_v11  ;;  %v1312_v22 = vmul.f32 %v1310_v17, %v1303_v14  ;;  %v1512_v16 = vpop.permute.xlu1 %1511 }
 0x462   : > { %v1315_v27 = vadd.f32 %v1313_v21, %v1301_v11  ;;  %v1314_v28 = vmul.f32 %v1312_v22, %v1303_v14 }
 0x464   : > { %v1317_v29 = vmul.f32 0.7978846, %v1315_v27  ;;  %v1316_v24 = vadd.f32 %v1314_v28, %v1303_v14  ;;  %v1506_v14 = vpack.c.bf16 %v208_v56, %v208_v56  ;;  %v1517_v27 = vpop.permute.xlu0 %1516 }
 0x466   : > { %v1318_v30 = vmul.f32 0.7978846, %v1316_v24  ;;  %1837 = vtanh.f32 %v1317_v29 }
 0x468   : > { %1839 = vtanh.f32 %v1318_v30 }
 0x473   : > { %v1838_v59 = vpop.eup %1837 }
 0x474   : > { %v1321_v31 = vadd.f32 1.0, %v1838_v59 }
 0x475   : > { %v1840_v46 = vpop.eup %1839 }
 0x476   : > { %v1322_v34 = vadd.f32 1.0, %v1840_v46  ;;  %v1323_v35 = vmul.f32 %v1321_v31, %v1307_v23 }
 0x478   : > { %v1324_v36 = vmul.f32 %v1322_v34, %v1308_v32  ;;  %v1326_v37 = vpack.c.bf16 %v1323_v35, %v1323_v35 }
 0x47a   : > { %v1327_v38 = vpack.c.bf16 %v1324_v36, %v1324_v36  ;;  %v1346_v45 = vand.u32 %v1344_v39, %v1326_v37 }
 0x47c   : > { %v1349_v8 = vand.u32 %v1344_v39, %v1327_v38 }
 0x47e   : > { %1365 = vmatprep.subr.bf16.mxu1 %v1349_v8 }
 0x47f   : > { %1366 = vmatpush1.bf16.msra.mxu1 %v1346_v45 }
 0x482   : > { %1793 = vmatmul.mubr.msk.bf16.vlgmr.msra.gmra.mxu1 %vm1338_vm13, %v1325_v54 }
 0x483   : > { %1692 = vmatprep.mubr.bf16.mxu1 %v1861_v2 }
 0x542   : > { %v1385_v52 = vpop.f32.mrf.mxu1 }
 0x543   : > { %v1386_v62 = vadd.f32 %v1385_v52, %v1331_v53 }
 0x544   : > { %v1387_v60 = vpop.f32.mrf.mxu1 }
 0x545   : > { %v1388_v19 = vadd.f32 %v1387_v60, %v1331_v53  ;;  %v1501_v4 = vadd.f32 %v1497_v0, %v1386_v62 }
 0x546   : > { %v1389_v63 = vpop.f32.mrf.mxu1 }
 0x547   : > { %v1390_v20 = vadd.f32 %v1389_v63, %v1336_v42  ;;  %v1502_v11 = vadd.f32 %v1498_v33, %v1388_v19 }
 0x548   : > { %v1391_v7 = vpop.f32.mrf.mxu1 }
 0x549   : > { %v1503_v5 = vadd.f32 %v1499_v1, %v1390_v20  ;;  %v1392_v10 = vadd.f32 %v1391_v7, %v1336_v42 }
 0x54b   : > { %v1507_v12 = vpack.c.bf16 %v1503_v5, %v1501_v4  ;;  %v1504_v13 = vadd.f32 %v1500_v3, %v1392_v10 }
 0x54d   : > { %v1508_v51 = vpack.c.bf16 %v1504_v13, %v1502_v11  ;;  %v1531_v44 = vsel %vm900_vm11, %v1507_v12, 0 }
 0x54f   : > { %1794 = vmatprep.subr.msk.bf16.mxu0 %vm900_vm11, %v1508_v51 }
 0x550   : > { %1551 = vmatpush1.bf16.msra.mxu0 %v1531_v44 }
 0x553   : > { %1795 = vmatmul.mubr.msk.bf16.vlgmr.msra.gmra.mxu0 %vm653_vm3, %v1505_v47 }
 0x554   : > { %1578 = vmatprep.mubr.bf16.mxu0 %v1861_v2 }
 0x55b   : > { %1796 = vmatmul.mubr.msk.bf16.gmra.mxu0 %vm653_vm3, %v1506_v14 }
 0x613   : > { %v1570_v17 = vpop.f32.mrf.mxu0 }
 0x614   : > { %v2282_v18 = vadd.f32 %v1570_v17, %v1512_v16 }
 0x615   : > { %v1572_v21 = vpop.f32.mrf.mxu0 }
 0x616   : > { %v2284_v22 = vadd.f32 %v1572_v21, %v1512_v16  ;;  %v1593_v28 = vmul.f32 0.044715, %v2282_v18 }
 0x617   : > { %v1574_v29 = vpop.f32.mrf.mxu0 }
 0x618   : > { %v1594_v2 = vmul.f32 0.044715, %v2284_v22  ;;  %v1575_v24 = vadd.f32 %v1574_v29, %v1517_v27  ;;  %v1599_v46 = vmul.f32 %v1593_v28, %v2282_v18  ;;  %v1588_v16 = vmul.f32 0.5, %v2284_v22 }
 0x619   : > { %v1576_v30 = vpop.f32.mrf.mxu0 }
 0x61a   : > { %v1600_v59 = vmul.f32 %v1594_v2, %v2284_v22  ;;  %v1595_v23 = vmul.f32 0.044715, %v1575_v24  ;;  %v1577_v31 = vadd.f32 %v1576_v30, %v1517_v27  ;;  %v1605_v40 = vmul.f32 %v1599_v46, %v2282_v18 }
 0x61b   : > { %v1580_v32 = vpop.f32.mrf.mxu0  ;;  %v1589_v27 = vmul.f32 0.5, %v1575_v24  ;;  %v1587_v30 = vmul.f32 0.5, %v2282_v18 }
 0x61c   : > { %v1606_v34 = vmul.f32 %v1600_v59, %v2284_v22  ;;  %v1601_v35 = vmul.f32 %v1595_v23, %v1575_v24  ;;  %v1596_v26 = vmul.f32 0.044715, %v1577_v31  ;;  %v1581_v25 = vadd.f32 %v1580_v32, %v1522_v15 }
 0x61d   : > { %v1582_v36 = vpop.f32.mrf.mxu0  ;;  %v1611_v57 = vadd.f32 %v1605_v40, %v2282_v18  ;;  %v1590_v44 = vmul.f32 0.5, %v1577_v31 }
 0x61e   : > { %v1607_v37 = vmul.f32 %v1601_v35, %v1575_v24  ;;  %v1602_v38 = vmul.f32 %v1596_v26, %v1577_v31  ;;  %v1583_v39 = vadd.f32 %v1582_v36, %v1522_v15  ;;  %v1597_v41 = vmul.f32 0.044715, %v1581_v25 }
 0x61f   : > { %v1584_v8 = vpop.f32.mrf.mxu0  ;;  %v1612_v45 = vadd.f32 %v1606_v34, %v2284_v22  ;;  %v1617_v19 = vmul.f32 0.7978846, %v1611_v57  ;;  %v1591_v12 = vmul.f32 0.5, %v1581_v25  ;;  %v209_v22 = vld [vmem:[%s2315_s2 + $0x78] sm:$0x1]  ;;  %v1649_v34 = vpop.permute.xlu1 %1648 }
 0x620   : > { %v1613_v54 = vadd.f32 %v1607_v37, %v1575_v24  ;;  %v1608_v58 = vmul.f32 %v1602_v38, %v1577_v31  ;;  %v1598_v42 = vmul.f32 0.044715, %v1583_v39  ;;  %v1603_v53 = vmul.f32 %v1597_v41, %v1581_v25 }
 0x621   : > { %v1585_v49 = vpop.f32.mrf.mxu0  ;;  %v1618_v61 = vmul.f32 0.7978846, %v1612_v45  ;;  %v1592_v50 = vmul.f32 0.5, %v1583_v39  ;;  %v1641_v32 = vpack.c.bf16 %v209_v22, %v209_v22 }
 0x622   : > { %v1604_v52 = vmul.f32 %v1598_v42, %v1583_v39  ;;  %v1614_v55 = vadd.f32 %v1608_v58, %v1577_v31  ;;  %v1609_v60 = vmul.f32 %v1603_v53, %v1581_v25  ;;  %v1619_v62 = vmul.f32 0.7978846, %v1613_v54 }
 0x624   : > { %v1610_v48 = vmul.f32 %v1604_v52, %v1583_v39  ;;  %v1620_v63 = vmul.f32 0.7978846, %v1614_v55  ;;  %v1615_v0 = vadd.f32 %v1609_v60, %v1581_v25 }
 0x626   : > { %v1616_v1 = vadd.f32 %v1610_v48, %v1583_v39  ;;  %1841 = vtanh.f32 %v1620_v63  ;;  %v1621_v20 = vmul.f32 0.7978846, %v1615_v0 }
 0x627   : > { %1843 = vtanh.f32 %v1618_v61 }
 0x628   : > { %1845 = vtanh.f32 %v1619_v62  ;;  %v1622_v33 = vmul.f32 0.7978846, %v1616_v1 }
 0x629   : > { %1847 = vtanh.f32 %v1621_v20 }
 0x62a   : > { %1849 = vtanh.f32 %v1622_v33 }
 0x62b   : > { %1851 = vtanh.f32 %v1617_v19 }
 0x633   : > { %v1842_v7 = vpop.eup %1841 }
 0x634   : > { %v1844_v3 = vpop.eup %1843  ;;  %v1632_v10 = vadd.f32 1.0, %v1842_v7 }
 0x635   : > { %v1846_v4 = vpop.eup %1845  ;;  %v1630_v47 = vadd.f32 1.0, %v1844_v3 }
 0x636   : > { %v1848_v5 = vpop.eup %1847  ;;  %v1631_v14 = vadd.f32 1.0, %v1846_v4  ;;  %v1638_v17 = vmul.f32 %v1632_v10, %v1590_v44 }
 0x637   : > { %v1850_v11 = vpop.eup %1849  ;;  %v1633_v13 = vadd.f32 1.0, %v1848_v5  ;;  %v1636_v2 = vmul.f32 %v1630_v47, %v1588_v16 }
 0x638   : > { %v1852_v9 = vpop.eup %1851  ;;  %v1634_v51 = vadd.f32 1.0, %v1850_v11  ;;  %v1637_v59 = vmul.f32 %v1631_v14, %v1589_v27 }
 0x639   : > { %v1639_v56 = vmul.f32 %v1633_v13, %v1591_v12  ;;  %v1629_v28 = vadd.f32 1.0, %v1852_v9  ;;  %v1643_v31 = vpack.c.bf16 %v1638_v17, %v1636_v2 }
 0x63a   : > { %v1640_v15 = vmul.f32 %v1634_v51, %v1592_v50 }
 0x63b   : > { %v1644_v21 = vpack.c.bf16 %v1639_v56, %v1639_v56  ;;  %v1635_v46 = vmul.f32 %v1629_v28, %v1587_v30 }
 0x63c   : > { %v1645_v29 = vpack.c.bf16 %v1640_v15, %v1640_v15 }
 0x63d   : > { %v1655_v23 = vsel %vm341_vm0, %v1644_v21, 0  ;;  %v1642_v24 = vpack.c.bf16 %v1637_v59, %v1635_v46 }
 0x63e   : > { %1797 = vmatprep.subr.msk.bf16.mxu1 %vm341_vm0, %v1645_v29 }
 0x63f   : > { %1673 = vmatpush1.bf16.msra.mxu1 %v1655_v23 }
 0x640   : > { %1674 = vmatprep.subr.bf16.mxu1 %v1643_v31 }
 0x643   : > { %1675 = vmatpush1.bf16.msra.mxu1 %v1642_v24 }
 0x646   : > { %1798 = vmatmul.mubr.msk.bf16.vlgmr.msra.gmra.mxu1 %vm337_vm1, %v1641_v32 }
 0x706   : > { %v1694_v18 = vpop.f32.mrf.mxu1 }
 0x707   : > { %v1695_v26 = vadd.f32 %v1694_v18, %v1649_v34 }
 0x708   : > { %v1696_v35 = vpop.f32.mrf.mxu1 }
 0x709   : > { %v1697_v25 = vadd.f32 %v1696_v35, %v1649_v34 }
 0x70a   : > { %v1698_v36 = vpop.f32.mrf.mxu1 }
 0x70b   : > { %v1703_v37 = vcombine.low %v1695_v26, %v1697_v25 }
 0x70c   : > { %v1699_v38 = vpop.f32.mrf.mxu1 }
 0x70d   : > { %v1710_v39 = vrot.slane %v1703_v37, %v1970_v43 }
 0x70f   : > { %v1717_v40 = vrot.slane %v1710_v39, %v1970_v43 }
 0x711   : > { %1723 = vst.msk [vmem:[%s192_s23] sm:$0x3] %vm1721_vm14, %v1717_v40 }
 0x712 PF: > { %s14_s15 = sadd.s32 1, %s1859_s15  }
 0x713   : > { %p11_p4 = scmp.ge.s32.totalorder %s14_s15, 4  }
 0x715   :  { %13 = sbr.rel (!%p11_p4) target bundleno = 1 (0x1), region = 66 }

</bundles_post_ra>
